<compile_context>
chip_gen: v6e
topology: v6e:2x2x1
jax: 0.10.0
libtpu: 0.0.40
codegen_flags: <defaults>
</compile_context>

<pallas_src>
import math

import jax
import jax.numpy as jnp
from jax.experimental import pallas as pl
from jax.experimental.pallas import tpu as pltpu


_LANE = 128                      # lane-dense last dim (unmasked stores)
_TARGET_BLOCK_BYTES = 4 << 20    # ~4 MiB blocks -> ~16 MiB double-buffered in+out
_VMEM_LIMIT_BYTES = 32 << 20     # explicit; safe on v5e/v6e (128 MiB) and v7x (64 MiB)
_PALLAS_MIN_BYTES = 2 << 20      # below this, XLA-fused multiply beats a kernel


def _round_up(x, m):
    return (x + m - 1) // m * m


def _drop_path_kernel(s_ref, x_ref, o_ref):
    """One grid step == one activation tile.

    s_ref : VMEM (TB, 1, 1) float32, per-sample floor(keep_prob + U)/keep_prob
    x_ref : VMEM (TB, TM, 128) input tile
    o_ref : VMEM (TB, TM, 128) output tile
    """
    # f32 broadcast multiply (x promotes to f32), then cast back to x's dtype.
    o_ref[...] = (x_ref[...] * s_ref[...]).astype(o_ref.dtype)


def _use_core_parallel():
    # Only chips with >1 TensorCore per device (v7x) benefit; plain "parallel"
    # is codegen-neutral elsewhere.
    try:
        kind = getattr(jax.devices()[0], "device_kind", "").lower()
    except Exception:
        return False
    return "v7" in kind


def _drop_path_pallas(x, scale, *, block_bytes=_TARGET_BLOCK_BYTES):
    """Apply per-sample scale with a tiled, lane-dense Pallas kernel."""
    N = x.shape[0]
    P = math.prod(x.shape[1:])
    itemsize = jnp.dtype(x.dtype).itemsize

    # Sublane multiple for fully-packed vregs: 8 (f32), 16 (bf16), 32 (int8/fp8).
    sub = 8 * max(1, 4 // itemsize)

    rows = pl.cdiv(P, _LANE)
    p_pad = rows * _LANE

    xf = x.reshape(N, P)
    if p_pad != P:
        # Lane pad only (<=127 elems/sample); skipped entirely when P % 128 == 0.
        xf = jnp.pad(xf, ((0, 0), (0, p_pad - P)))
    x3 = xf.reshape(N, rows, _LANE)
    s3 = scale.astype(jnp.float32).reshape(N, 1, 1)

    # Rows per ~block_bytes block, kept a sublane multiple.
    rows_cap = max(sub, (block_bytes // (_LANE * itemsize)) // sub * sub)

    if rows > rows_cap:
        # Path A: large per-sample activation -> tile rows within each sample.
        # Last row-chunk may be partial; Pallas masks the partial store.
        n_blocks = pl.cdiv(rows, rows_cap)
        tm = min(rows_cap, _round_up(pl.cdiv(rows, n_blocks), sub))
        n_blocks = pl.cdiv(rows, tm)
        grid = (N * n_blocks,)          # flattened for balanced core sharding
        in_specs = [
            pl.BlockSpec((1, 1, 1), lambda g: (g // n_blocks, 0, 0)),
            pl.BlockSpec((1, tm, _LANE), lambda g: (g // n_blocks, g % n_blocks, 0)),
        ]
        out_spec = pl.BlockSpec((1, tm, _LANE),
                                lambda g: (g // n_blocks, g % n_blocks, 0))
    else:
        # Path B: small per-sample activation -> batch TB samples per block so
        # every grid step still moves multi-MiB. Last batch block may be partial.
        tb = max(1, min(N, block_bytes // max(1, rows * _LANE * itemsize)))
        grid = (pl.cdiv(N, tb),)
        in_specs = [
            pl.BlockSpec((tb, 1, 1), lambda g: (g, 0, 0)),
            pl.BlockSpec((tb, rows, _LANE), lambda g: (g, 0, 0)),
        ]
        out_spec = pl.BlockSpec((tb, rows, _LANE), lambda g: (g, 0, 0))

    def call(sem):
        return pl.pallas_call(
            _drop_path_kernel,
            out_shape=jax.ShapeDtypeStruct(x3.shape, x3.dtype),
            grid=grid,
            in_specs=in_specs,
            out_specs=out_spec,
            compiler_params=pltpu.CompilerParams(
                dimension_semantics=sem,
                vmem_limit_bytes=_VMEM_LIMIT_BYTES,
            ),
        )(s3, x3)

    if _use_core_parallel():
        try:
            out = call((pltpu.CORE_PARALLEL,))   # shard flat grid across 2 TCs
        except Exception:
            out = call(("parallel",))            # conservative fallback
    else:
        out = call(("parallel",))

    out = out.reshape(N, p_pad)
    if p_pad != P:
        out = out[:, :P]
    return out.reshape(x.shape)


def drop_path(x, drop_prob, key, training=True, use_pallas=None,
              block_bytes=_TARGET_BLOCK_BYTES):
    """JAX/Pallas equivalent of mmseg DropPath.forward (any rank, batch-first).

    drop_prob and training must be Python constants (not traced values).
    """
    if drop_prob == 0.0 or not training:
        return x
    keep_prob = 1.0 - drop_prob
    N = x.shape[0]

    # Per-sample mask & scale computed once in float32 (avoids low-precision
    # bias in floor(keep_prob + U) and 1/keep_prob for bf16/fp8 activations).
    rand = jax.random.uniform(key, (N,), dtype=jnp.float32)
    scale = jnp.floor(keep_prob + rand) / keep_prob       # (N,) f32: {0, 1/keep_prob}

    if use_pallas is None:
        # Bytes-based cutoff: below ~2 MiB launch/grid fixed costs dominate and
        # XLA fuses the broadcast multiply into neighboring elementwise ops.
        use_pallas = x.size * jnp.dtype(x.dtype).itemsize >= _PALLAS_MIN_BYTES

    if not use_pallas:
        bshape = (N,) + (1,) * (x.ndim - 1)
        return (x.astype(jnp.float32) * scale.reshape(bshape)).astype(x.dtype)

    return _drop_path_pallas(x, scale, block_bytes=block_bytes)


if __name__ == "__main__":
    key = jax.random.PRNGKey(0)
    kx, kmask = jax.random.split(key)

    # --- Test 1: small NCHW f32, P % 128 == 0 (no pad), batched-sample path.
    x = jax.random.normal(kx, (2, 4, 16, 16), dtype=jnp.float32)
    drop_prob = 0.25
    keep_prob = 1.0 - drop_prob
    y = jax.block_until_ready(
        drop_path(x, drop_prob, kmask, training=True, use_pallas=True))
    rand = jax.random.uniform(kmask, (x.shape[0],), dtype=jnp.float32)
    mask = jnp.floor(keep_prob + rand).reshape(-1, 1, 1, 1)
    ref = x / keep_prob * mask
    assert y.shape == x.shape and y.dtype == x.dtype
    assert jnp.allclose(y, ref, atol=1e-5, rtol=1e-5), "f32 mismatch vs reference"

    # Eval mode / drop_prob == 0 must be identity (no kernel launch).
    assert jnp.array_equal(drop_path(x, drop_prob, kmask, training=False), x)
    assert jnp.array_equal(drop_path(x, 0.0, kmask, training=True), x)

    # --- Test 2: ragged size + bf16: lane-pad path and sublane=16 packing.
    xb = jax.random.normal(kx, (4, 3, 50, 7), dtype=jnp.bfloat16)   # P=1050
    yb = jax.block_until_ready(
        drop_path(xb, 0.5, kmask, training=True, use_pallas=True))
    rb = jax.random.uniform(kmask, (4,), dtype=jnp.float32)
    mb = jnp.floor(0.5 + rb).reshape(-1, 1, 1, 1)
    refb = (xb.astype(jnp.float32) / 0.5 * mb).astype(jnp.bfloat16)
    assert yb.shape == xb.shape and yb.dtype == xb.dtype
    assert jnp.allclose(yb.astype(jnp.float32), refb.astype(jnp.float32),
                        atol=1e-2, rtol=1e-2), "bf16 mismatch vs reference"

    # --- Test 3: force the row-chunked path (flattened 1-D grid, partial last
    # row-chunk masked) by shrinking the block-byte target at a small shape.
    xc = jax.random.normal(kx, (2, 4, 33, 128), dtype=jnp.float32)   # rows=132
    yc = jax.block_until_ready(
        drop_path(xc, 0.25, kmask, training=True, use_pallas=True, block_bytes=4096))
    rc = jax.random.uniform(kmask, (2,), dtype=jnp.float32)
    mc = jnp.floor(0.75 + rc).reshape(-1, 1, 1, 1)
    refc = xc / 0.75 * mc
    assert yc.shape == xc.shape and yc.dtype == xc.dtype
    assert jnp.allclose(yc, refc, atol=1e-5, rtol=1e-5), "chunked-path mismatch"

    print("KERNEL_OK")
</pallas_src>

<mosaic_0001>
module attributes {stable_mosaic.version = 11 : i64} {
  func.func @_drop_path_kernel(%arg0: i32, %arg1: memref<2x1x1xf32, #tpu.memory_space<vmem>>, %arg2: memref<2x8x128xf32, #tpu.memory_space<vmem>>, %arg3: memref<2x8x128xf32, #tpu.memory_space<vmem>>) attributes {dimension_semantics = [#tpu.dimension_semantics<parallel>], iteration_bounds = array<i64: 1>, scalar_prefetch = 0 : i64, scratch_operands = 0 : i64, tpu.core_type = #tpu.core_type<tc>, window_params = [{transform_indices = @transform_0, window_bounds = array<i64: 2, 1, 1>}, {transform_indices = @transform_1, window_bounds = array<i64: 2, 8, 128>}, {transform_indices = @transform_2, window_bounds = array<i64: 2, 8, 128>}]} {
    %c0 = arith.constant 0 : index
    %c0_0 = arith.constant 0 : index
    %c0_1 = arith.constant 0 : index
    %0 = vector.load %arg2[%c0, %c0_0, %c0_1] : memref<2x8x128xf32, #tpu.memory_space<vmem>>, vector<2x8x128xf32>
    %c0_2 = arith.constant 0 : index
    %c0_3 = arith.constant 0 : index
    %c0_4 = arith.constant 0 : index
    %1 = vector.load %arg1[%c0_2, %c0_3, %c0_4] : memref<2x1x1xf32, #tpu.memory_space<vmem>>, vector<2x1x1xf32>
    %2 = vector.broadcast %1 : vector<2x1x1xf32> to vector<2x8x128xf32>
    %3 = arith.mulf %0, %2 : vector<2x8x128xf32>
    %c0_5 = arith.constant 0 : index
    %c0_6 = arith.constant 0 : index
    %c0_7 = arith.constant 0 : index
    %4 = vector.load %arg3[%c0_5, %c0_6, %c0_7] : memref<2x8x128xf32, #tpu.memory_space<vmem>>, vector<2x8x128xf32>
    tpu.vector_store %arg3[%c0_5, %c0_6, %c0_7], %3 {strides = array<i32>} : memref<2x8x128xf32, #tpu.memory_space<vmem>>, vector<2x8x128xf32>,
    return
  }
  func.func @transform_0(%arg0: i32) -> (i32, i32, i32) {
    %c0_i32 = arith.constant 0 : i32
    %c0_i32_0 = arith.constant 0 : i32
    %c0_i32_1 = arith.constant 0 : i32
    return %arg0, %c0_i32, %c0_i32_0 : i32, i32, i32
  }
  func.func @transform_1(%arg0: i32) -> (i32, i32, i32) {
    %c0_i32 = arith.constant 0 : i32
    %c0_i32_0 = arith.constant 0 : i32
    %c0_i32_1 = arith.constant 0 : i32
    return %arg0, %c0_i32, %c0_i32_0 : i32, i32, i32
  }
  func.func @transform_2(%arg0: i32) -> (i32, i32, i32) {
    %c0_i32 = arith.constant 0 : i32
    %c0_i32_0 = arith.constant 0 : i32
    %c0_i32_1 = arith.constant 0 : i32
    return %arg0, %c0_i32, %c0_i32_0 : i32, i32, i32
  }
}

</mosaic_0001>

<bundles_post_ra>
// kernel: tpu_custom_call.1
= control target key start
LH: loop header
LB: loop body
LE: loop exit
PB: predicated region body
PF: predicated region fallthrough
CT: control target
= control target key end

     0   :  { %7 = vsyncpa [#allocation3], 0  ;;  %s159_s0 = inlined_call_operand.vmem [shape: f32[2,1,1], index: 0, kind: input, shape index: {}]   ;;  %s160_s1 = inlined_call_operand.hbm [shape: f32[2,8,128], index: 1, kind: input, shape index: {}]   ;;  %s161_s2 = inlined_call_operand.hbm [shape: f32[2,8,128], index: 2, kind: output, shape index: {}]  }
   0x1   :  { %8 = vsyncpa [#allocation4], 0  ;;  %s121_s9 = smov [#allocation2]  }
   0x2   :  { %s16_s10 = sshll.u32 %s121_s9, 4  ;;  %s17_s10 = int_to_ptr.vmem [resolvable:$true] %s16_s10 }
   0x3   :  { %s85_s11 = scalar_lea.vmem %s17_s10, 256  ;;  %p90_p1 = scmp.lt.s32.totalorder %s17_s10, %s17_s10 }
   0x4   :  { %p86_p0 = scmp.ne.s32.totalorder %s17_s10, %s85_s11  ;;  %p91_p2 = scmp.lt.s32.totalorder %s85_s11, %s85_s11 }
   0x6   :  { %p92_p3 = por %p91_p2, %p90_p1 }
   0x8   :  { %p93_p4 = pnand %p92_p3, %p86_p0 }
   0xa   :  { %96 = shalt.err (!%p93_p4)
}
   0xb   :  { %s122_s12 = smov 128   ;;  %s123_s13 = smov 8  }
   0xc   :  { %22 = dma.hbm_to_vmem [thread:$0]  %s160_s1, 256, %s17_s10, [#allocation3], %s122_s12, %s122_s12, %s123_s13  }
   0xd   :  { %117 = dma.done.wait [#allocation3], 256  }
   0xe   :  { %118 = vsyncadd [#allocation3], 4294967040  ;;  %v124_v0 = vmov 0   ;;  %v69_v1 = vld [vmem:[%s159_s0] ss:$0 sm:$0xff]  ;;  %v27_v6 = vld [vmem:[#allocation2 + $0x8] sm:$0xff] }
   0xf   :  { %76 = vset.pattern.permute.xlu0 %v124_v0  ;;  %v70_v2 = vld [vmem:[%s159_s0 + $0x1] ss:$0 sm:$0xff]  ;;  %s125_s20 = smov [#allocation5]  }
  0x10   :  { %41 = vperm.xlu0 %76, %v69_v1   ;;  %v26_v3 = vld [vmem:[#allocation2] sm:$0xff]  ;;  %s57_s1 = sshll.u32 %s125_s20, 4  ;;  %s58_s1 = int_to_ptr.vmem [resolvable:$true] %s57_s1 }
  0x11   :  { %s97_s21 = scalar_lea.vmem %s58_s1, 256  ;;  %p102_p6 = scmp.lt.s32.totalorder %s58_s1, %s58_s1 }
  0x12   :  { %p98_p5 = scmp.ne.s32.totalorder %s58_s1, %s97_s21  ;;  %p103_p7 = scmp.lt.s32.totalorder %s97_s21, %s97_s21 }
  0x14   :  { %45 = vperm.xlu0 %76, %v70_v2   ;;  %p104_p8 = por %p103_p7, %p102_p6 }
  0x16   :  { %p105_p9 = pnand %p104_p8, %p98_p5 }
  0x8b   :  { %v42_v4 = vpop.permute.xlu0 %41 }
  0x8c   :  { %v48_v5 = vmul.f32 %v42_v4, %v26_v3 }
  0x8e   :  { %50 = vst [vmem:[#allocation5] sm:$0xff] %v48_v5 }
  0x8f   :  { %v46_v7 = vpop.permute.xlu0 %45 }
  0x90   :  { %v49_v8 = vmul.f32 %v46_v7, %v27_v6 }
  0x92   :  { %51 = vst [vmem:[#allocation5 + $0x8] sm:$0xff] %v49_v8 }
  0x93   :  { %108 = shalt.err (!%p105_p9)
}
  0x94   :  { %63 = dma.vmem_to_hbm [thread:$0]  %s58_s1, 256, %s161_s2, [#allocation4], %s122_s12, %s122_s12, %s123_s13  }
  0x95   :  { %119 = dma.done.wait [#allocation4], 256  }
  0x96   :  { %120 = vsyncadd [#allocation4], 4294967040 }
  0x97   :  { %67 = vsyncpa [#allocation3], 1 }
  0x98   :  { %68 = vsyncpa [#allocation4], 1 }

</bundles_post_ra>
